<compile_context>
chip_gen: v7x
topology: tpu7x:2x2x1
jax: 0.10.0
libtpu: 0.0.40
codegen_flags: <defaults>
</compile_context>

<pallas_src>
from functools import partial

import jax
import jax.numpy as jnp
from jax import lax
from jax.experimental import pallas as pl
from jax.experimental.pallas import tpu as pltpu

# ---- hyperparameters (small, consistent with the module defaults) ----------
VOCAB_SIZE   = 50
EMBED_DIM    = 32
NUM_FILTERS  = 16
KERNEL_SIZE  = 3
NUM_CLASSES  = 2
DROPOUT_PROB = 0.5   # identity at inference (eval mode)

BATCH   = 2
SEQ_LEN = 16

LANE = 128           # each conv tap block is padded to a full lane tile


def cnn_fused_kernel(ids_ref, emb_ref, wcat_ref, bconv_ref, wfct_ref, bfc_ref,
                     out_ref, *, B, L, K):
    """Whole forward pass for the whole batch, single kernel invocation.

    ids_ref  : (1, B*L)     int32   token ids, lane-major
    emb_ref  : (V, E)       float32 embedding table (row 0 zero: padding_idx=0)
    wcat_ref : (E, K*LANE)  float32 conv weight, taps concatenated, each tap
                                    block zero-padded from F to LANE lanes
    bconv_ref: (1, LANE)    float32 conv bias, zero-padded
    wfct_ref : (LANE, C)    float32 fc weight, transposed + zero-padded rows
    bfc_ref  : (1, C)       float32 fc bias
    out_ref  : (B, C)       float32 logits
    """
    V = emb_ref.shape[0]
    BL = B * L
    L_out = L - K + 1

    # ---- embedding gather: transposed one-hot on the MXU -------------------
    ids = ids_ref[...]                                             # (1, BL) i32
    vocab_iota = lax.broadcasted_iota(jnp.int32, (V, BL), 0)
    onehot = (vocab_iota == ids).astype(jnp.float32)               # (V, BL)
    # contract the vocab dim of both operands -> (BL, E)
    x = lax.dot_general(onehot, emb_ref[...],
                        dimension_numbers=(((0,), (0,)), ((), ())),
                        preferred_element_type=jnp.float32)

    # ---- Conv1d: ONE matmul over all K taps (lane-aligned tap blocks) ------
    y = jnp.dot(x, wcat_ref[...],
                preferred_element_type=jnp.float32)                # (BL, K*LANE)

    acc = y[:, 0:LANE]                                             # tap k=0
    for k in range(1, K):                                          # K small & static
        # result row t needs y[t + k] of tap block k: sublane roll on the XLU.
        acc = acc + pltpu.roll(y[:, k * LANE:(k + 1) * LANE], BL - k, axis=0)
    acc = jnp.maximum(acc + bconv_ref[...], 0.0)                   # bias + ReLU

    # mask rows whose conv window crosses a sequence boundary (also covers the
    # roll wraparound rows). Safe only because ReLU guarantees values >= 0.
    row = lax.broadcasted_iota(jnp.int32, (BL, LANE), 0)
    pos = (row & (L - 1)) if (L & (L - 1)) == 0 else (row % L)
    acc = jnp.where(pos < L_out, acc, 0.0)

    # ---- AdaptiveMaxPool1d(1): per-sequence max over sublane blocks --------
    pooled = jnp.max(acc.reshape(B, L, LANE), axis=1)              # (B, LANE)

    # TODO(synk): nn.Dropout(p=0.5) is identity in eval/inference mode; omitted.

    # ---- Linear: one MXU push; padded lanes of pooled/wfct are zero --------
    logits = jnp.dot(pooled, wfct_ref[...],
                     preferred_element_type=jnp.float32) + bfc_ref[...]   # (B, C)

    out_ref[...] = logits.astype(out_ref.dtype)


def prepare_kernel_params(torch_params):
    """One-time fold of torch-layout params into kernel layout."""
    emb, wconv, bconv, wfc, bfc = torch_params
    F, E, K = wconv.shape
    C = wfc.shape[0]
    # (F, E, K) -> (E, K, F) -> pad F->LANE -> (E, K*LANE); column k*LANE + f
    # holds wconv[f, :, k], columns f >= F are zero.
    w = jnp.transpose(wconv, (1, 2, 0))                       # (E, K, F)
    w = jnp.pad(w, ((0, 0), (0, 0), (0, LANE - F)))           # (E, K, LANE)
    wcat = w.reshape(E, K * LANE)
    bconv_p = jnp.pad(bconv.reshape(1, F), ((0, 0), (0, LANE - F)))   # (1, LANE)
    wfct = jnp.pad(wfc.T, ((0, LANE - F), (0, 0)))            # (LANE, C), zero rows
    return emb, wcat, bconv_p, wfct, bfc.reshape(1, C)


@jax.jit
def cnn_classifier_forward(input_ids, kparams):
    emb, wcat, bconv, wfct, bfc = kparams
    B, L = input_ids.shape
    K = wcat.shape[1] // LANE
    C = bfc.shape[1]

    ids = input_ids.reshape(1, B * L).astype(jnp.int32)       # lane-major ids

    vmem = pl.BlockSpec(memory_space=pltpu.MemorySpace.VMEM)
    return pl.pallas_call(
        partial(cnn_fused_kernel, B=B, L=L, K=K),
        out_shape=jax.ShapeDtypeStruct((B, C), jnp.float32),
        in_specs=[vmem, vmem, vmem, vmem, vmem, vmem],        # gridless: whole arrays in VMEM
        out_specs=vmem,
    )(ids, emb, wcat, bconv, wfct, bfc)


def make_params(key):
    """Parameters in PyTorch layouts: wconv (F,E,K), wfc (C,F)."""
    k_emb, k_wc, k_bc, k_wf, k_bf = jax.random.split(key, 5)

    emb = jax.random.normal(k_emb, (VOCAB_SIZE, EMBED_DIM), jnp.float32)
    emb = emb.at[0].set(0.0)                          # padding_idx=0

    bound_c = (1.0 / (EMBED_DIM * KERNEL_SIZE)) ** 0.5
    wconv = jax.random.uniform(k_wc, (NUM_FILTERS, EMBED_DIM, KERNEL_SIZE),
                               jnp.float32, -bound_c, bound_c)
    bconv = jax.random.uniform(k_bc, (NUM_FILTERS,), jnp.float32,
                               -bound_c, bound_c)

    bound_f = (1.0 / NUM_FILTERS) ** 0.5
    wfc = jax.random.uniform(k_wf, (NUM_CLASSES, NUM_FILTERS), jnp.float32,
                             -bound_f, bound_f)
    bfc = jax.random.uniform(k_bf, (NUM_CLASSES,), jnp.float32,
                             -bound_f, bound_f)
    return emb, wconv, bconv, wfc, bfc


def reference_forward(input_ids, torch_params):
    """Pure-JAX reference matching the PyTorch forward (eval mode)."""
    emb, wconv, bconv, wfc, bfc = torch_params
    x = jnp.take(emb, input_ids, axis=0)              # (B, L, E)
    F, E, K = wconv.shape
    L_out = x.shape[1] - K + 1
    acc = jnp.zeros((x.shape[0], L_out, F), jnp.float32)
    for k in range(K):
        acc = acc + jnp.einsum('ble,fe->blf', x[:, k:k + L_out, :], wconv[:, :, k])
    acc = jnp.maximum(acc + bconv[None, None, :], 0.0)    # conv + bias + relu
    pooled = jnp.max(acc, axis=1)                         # (B, F)
    return pooled @ wfc.T + bfc[None, :]                  # (B, C)


if __name__ == "__main__":
    key = jax.random.PRNGKey(0)
    k_params, k_ids = jax.random.split(key)

    torch_params = make_params(k_params)
    kparams = prepare_kernel_params(torch_params)

    input_ids = jax.random.randint(k_ids, (BATCH, SEQ_LEN), 0, VOCAB_SIZE,
                                   dtype=jnp.int32)
    # include some padding tokens (id 0), like real text batches
    input_ids = input_ids.at[:, -2:].set(0)

    # in-kernel one-hot gather maps out-of-range ids to a zero row instead of
    # faulting (PyTorch would error) -> guard at the wrapper boundary.
    assert int(input_ids.min()) >= 0 and int(input_ids.max()) < VOCAB_SIZE

    logits = cnn_classifier_forward(input_ids, kparams)
    logits = jax.block_until_ready(logits)

    ref = reference_forward(input_ids, torch_params)
    assert logits.shape == (BATCH, NUM_CLASSES)
    assert jnp.allclose(logits, ref, atol=1e-5, rtol=1e-5)

    print("KERNEL_OK")
</pallas_src>

<mosaic_0001>
module attributes {stable_mosaic.version = 11 : i64} {
  func.func @cnn_fused_kernel(%arg0: memref<1x32xi32, #tpu.memory_space<vmem>>, %arg1: memref<50x32xf32, #tpu.memory_space<vmem>>, %arg2: memref<32x384xf32, #tpu.memory_space<vmem>>, %arg3: memref<1x128xf32, #tpu.memory_space<vmem>>, %arg4: memref<128x2xf32, #tpu.memory_space<vmem>>, %arg5: memref<1x2xf32, #tpu.memory_space<vmem>>, %arg6: memref<2x2xf32, #tpu.memory_space<vmem>>) attributes {dimension_semantics = [], scalar_prefetch = 0 : i64, scratch_operands = 0 : i64, tpu.core_type = #tpu.core_type<tc>} {
    %c0 = arith.constant 0 : index
    %c0_0 = arith.constant 0 : index
    %0 = vector.load %arg0[%c0, %c0_0] : memref<1x32xi32, #tpu.memory_space<vmem>>, vector<1x32xi32>
    %1 = tpu.iota {dimensions = array<i32: 0>} : vector<50x32xi32>
    %2 = vector.broadcast %0 : vector<1x32xi32> to vector<50x32xi32>
    %3 = arith.cmpi eq, %1, %2 : vector<50x32xi32>
    %4 = arith.extui %3 : vector<50x32xi1> to vector<50x32xi32>
    %5 = arith.sitofp %4 : vector<50x32xi32> to vector<50x32xf32>
    %c0_1 = arith.constant 0 : index
    %c0_2 = arith.constant 0 : index
    %6 = vector.load %arg1[%c0_1, %c0_2] : memref<50x32xf32, #tpu.memory_space<vmem>>, vector<50x32xf32>
    %cst = arith.constant dense<0.000000e+00> : vector<32x32xf32>
    %7 = tpu.matmul %5, %6, %cst {dimension_numbers = #tpu.dot_dimension_numbers<[0], [0], [1], [1], [0, 1, 1, 1], [], []>} : vector<50x32xf32>, vector<50x32xf32>, vector<32x32xf32> -> vector<32x32xf32>
    %c0_3 = arith.constant 0 : index
    %c0_4 = arith.constant 0 : index
    %8 = vector.load %arg2[%c0_3, %c0_4] : memref<32x384xf32, #tpu.memory_space<vmem>>, vector<32x384xf32>
    %cst_5 = arith.constant dense<0.000000e+00> : vector<32x384xf32>
    %9 = tpu.matmul %7, %8, %cst_5 {dimension_numbers = #tpu.dot_dimension_numbers<[1], [0], [0], [1], [0, 0, 1, 1], [], []>} : vector<32x32xf32>, vector<32x384xf32>, vector<32x384xf32> -> vector<32x384xf32>
    %10 = vector.extract_strided_slice %9 {offsets = [0, 0], sizes = [32, 128], strides = [1, 1]} : vector<32x384xf32> to vector<32x128xf32>
    %11 = vector.extract_strided_slice %9 {offsets = [0, 128], sizes = [32, 128], strides = [1, 1]} : vector<32x384xf32> to vector<32x128xf32>
    %c31_i32 = arith.constant 31 : i32
    %12 = tpu.dynamic_rotate %11 by %c31_i32 dim 0 : vector<32x128xf32>, i32 -> vector<32x128xf32>
    %13 = arith.addf %10, %12 : vector<32x128xf32>
    %14 = vector.extract_strided_slice %9 {offsets = [0, 256], sizes = [32, 128], strides = [1, 1]} : vector<32x384xf32> to vector<32x128xf32>
    %c30_i32 = arith.constant 30 : i32
    %15 = tpu.dynamic_rotate %14 by %c30_i32 dim 0 : vector<32x128xf32>, i32 -> vector<32x128xf32>
    %16 = arith.addf %13, %15 : vector<32x128xf32>
    %c0_6 = arith.constant 0 : index
    %c0_7 = arith.constant 0 : index
    %17 = vector.load %arg3[%c0_6, %c0_7] : memref<1x128xf32, #tpu.memory_space<vmem>>, vector<1x128xf32>
    %18 = vector.broadcast %17 : vector<1x128xf32> to vector<32x128xf32>
    %19 = arith.addf %16, %18 : vector<32x128xf32>
    %cst_8 = arith.constant 0.000000e+00 : f32
    %20 = vector.broadcast %cst_8 : f32 to vector<32x128xf32>
    %21 = arith.maximumf %19, %20 : vector<32x128xf32>
    %22 = tpu.iota {dimensions = array<i32: 0>} : vector<32x128xi32>
    %c15_i32 = arith.constant 15 : i32
    %23 = vector.broadcast %c15_i32 : i32 to vector<32x128xi32>
    %24 = arith.andi %22, %23 : vector<32x128xi32>
    %c14_i32 = arith.constant 14 : i32
    %25 = vector.broadcast %c14_i32 : i32 to vector<32x128xi32>
    %26 = arith.cmpi slt, %24, %25 : vector<32x128xi32>
    %cst_9 = arith.constant 0.000000e+00 : f32
    %27 = vector.broadcast %cst_9 : f32 to vector<32x128xf32>
    %28 = arith.select %26, %21, %27 : vector<32x128xi1>, vector<32x128xf32>
    %29 = vector.shape_cast %28 : vector<32x128xf32> to vector<2x16x128xf32>
    %cst_10 = arith.constant dense<0xFF800000> : vector<2x128xf32>
    %30 = vector.multi_reduction <maximumf>, %29, %cst_10 [1] : vector<2x16x128xf32> to vector<2x128xf32>
    %c0_11 = arith.constant 0 : index
    %c0_12 = arith.constant 0 : index
    %31 = vector.load %arg4[%c0_11, %c0_12] : memref<128x2xf32, #tpu.memory_space<vmem>>, vector<128x2xf32>
    %cst_13 = arith.constant dense<0.000000e+00> : vector<2x2xf32>
    %32 = tpu.matmul %30, %31, %cst_13 {dimension_numbers = #tpu.dot_dimension_numbers<[1], [0], [0], [1], [0, 0, 1, 1], [], []>} : vector<2x128xf32>, vector<128x2xf32>, vector<2x2xf32> -> vector<2x2xf32>
    %c0_14 = arith.constant 0 : index
    %c0_15 = arith.constant 0 : index
    %33 = vector.load %arg5[%c0_14, %c0_15] : memref<1x2xf32, #tpu.memory_space<vmem>>, vector<1x2xf32>
    %34 = vector.broadcast %33 : vector<1x2xf32> to vector<2x2xf32>
    %35 = arith.addf %32, %34 : vector<2x2xf32>
    %c0_16 = arith.constant 0 : index
    %c0_17 = arith.constant 0 : index
    %36 = vector.load %arg6[%c0_16, %c0_17] : memref<2x2xf32, #tpu.memory_space<vmem>>, vector<2x2xf32>
    tpu.vector_store %arg6[%c0_16, %c0_17], %35 {strides = array<i32>} : memref<2x2xf32, #tpu.memory_space<vmem>>, vector<2x2xf32>,
    return
  }
}

</mosaic_0001>

<bundles_post_ra>
// kernel: cnn_classifier_forward.1
= control target key start
LH: loop header
LB: loop body
LE: loop exit
PB: predicated region body
PF: predicated region fallthrough
CT: control target
= control target key end

     0   :  { %v25_v0 = vlaneseq  ;;  %v787_v7 = vmov 0.0   ;;  %s1008_s0 = inlined_call_operand.vmem [shape: s32[1,32], index: 0, kind: input, shape index: {}]   ;;  %s1009_s1 = inlined_call_operand.vmem [shape: f32[50,32], index: 1, kind: input, shape index: {}]   ;;  %s1010_s2 = inlined_call_operand.vmem [shape: f32[32,384], index: 2, kind: input, shape index: {}]   ;;  %s1011_s3 = inlined_call_operand.vmem [shape: f32[1,128], index: 3, kind: input, shape index: {}]   ;;  %s1012_s4 = inlined_call_operand.vmem [shape: f32[128,2], index: 4, kind: input, shape index: {}]   ;;  %s1013_s5 = inlined_call_operand.vmem [shape: f32[1,2], index: 5, kind: input, shape index: {}]   ;;  %s1014_s6 = inlined_call_operand.hbm [shape: f32[2,2], index: 6, kind: output, shape index: {}]  }
   0x1   :  { %v58_v1 = vld [vmem:[%s1009_s1] sm:$0xff]  ;;  %v59_v2 = vld [vmem:[%s1009_s1 + $0x8] sm:$0xff]  ;;  %v60_v5 = vld [vmem:[%s1009_s1 + $0x10] sm:$0xff]  ;;  %288 = vmatprep.mubr.f32.mxu1 %v787_v7 }
   0x2   :  { %v835_v3 = vld [vmem:[%s1008_s0] ss:$0 sm:$0xff]  ;;  %v707_v4 = vpack.c.bf16 %v59_v2, %v58_v1  ;;  %v61_v6 = vld [vmem:[%s1009_s1 + $0x18] sm:$0xff]  ;;  %v844_v8 = vshrl.u32 %v25_v0, 7  ;;  %v63_v11 = vld [vmem:[%s1009_s1 + $0x28] sm:$0xff] }
   0x3   :  { %v711_v9 = vpack.c.bf16 %v61_v6, %v60_v5  ;;  %v62_v10 = vld [vmem:[%s1009_s1 + $0x20] sm:$0xff] }
   0x4   :  { %11 = vsyncpa [#allocation3], 0  ;;  %708 = vmatprep.subr.bf16.mxu0 %v707_v4  ;;  %vm37_vm0 = vcmp.eq.s32.totalorder %v844_v8, %v835_v3  ;;  %v855_v12 = vadd.s32 8, %v844_v8  ;;  %v28_v13 = vadd.s32 16, %v844_v8  ;;  %v715_v15 = vpack.c.bf16 %v63_v11, %v62_v10  ;;  %v64_v18 = vld [vmem:[%s1009_s1 + $0x30] sm:$0x3] }
   0x5   :  { %710 = vmatpush3.bf16.msra.mxu0 %v707_v4  ;;  %v580_v14 = vsel %vm37_vm0, 1.0, %v787_v7  ;;  %v864_v17 = vadd.s32 24, %v844_v8  ;;  %vm110_vm3 = vcmask 1041408   ;;  %v30_v20 = vadd.s32 32, %v844_v8  ;;  %v200_v24 = vld [vmem:[%s1010_s2 + $0x8] sm:$0xff]  ;;  %v203_v25 = vld [vmem:[%s1010_s2 + $0x20] sm:$0xff] }
   0x6   :  { %712 = vmatprep.subr.bf16.mxu0 %v711_v9  ;;  %65 = vxpose.xlu0.b32.start [1/7] (short) (narrow) %v580_v14, 32  ;;  %vm38_vm1 = vcmp.eq.s32.totalorder %v855_v12, %v835_v3  ;;  %vm39_vm2 = vcmp.eq.s32.totalorder %v28_v13, %v835_v3  ;;  %v31_v22 = vadd.s32 40, %v844_v8  ;;  %v199_v26 = vld [vmem:[%s1010_s2] sm:$0xff]  ;;  %v32_v27 = vadd.s32 48, %v844_v8  ;;  %v202_v29 = vld [vmem:[%s1010_s2 + $0x18] sm:$0xff]  ;;  %v201_v30 = vld [vmem:[%s1010_s2 + $0x10] sm:$0xff] }
   0x7   :  { %v581_v16 = vsel %vm38_vm1, 1.0, %v787_v7  ;;  %v582_v19 = vsel %vm39_vm2, 1.0, %v787_v7  ;;  %vm40_vm4 = vcmp.eq.s32.totalorder %v864_v17, %v835_v3  ;;  %vm41_vm5 = vcmp.eq.s32.totalorder %v30_v20, %v835_v3  ;;  %v204_v31 = vld [vmem:[%s1010_s2 + $0x28] sm:$0xff]  ;;  %v206_v34 = vld [vmem:[%s1010_s2 + $0x38] sm:$0xff]  ;;  %v209_v35 = vld [vmem:[%s1010_s2 + $0x50] sm:$0xff]  ;;  %s790_s15 = smov [#allocation2]  }
   0x8   :  { %v583_v21 = vsel %vm40_vm4, 1.0, %v787_v7  ;;  %v584_v23 = vsel %vm41_vm5, 1.0, %v787_v7  ;;  %vm42_vm6 = vcmp.eq.s32.totalorder %v31_v22, %v835_v3  ;;  %v719_v28 = vpack.c.bf16 %v203_v25, %v200_v24  ;;  %v205_v36 = vld [vmem:[%s1010_s2 + $0x30] sm:$0xff]  ;;  %v208_v38 = vld [vmem:[%s1010_s2 + $0x48] sm:$0xff]  ;;  %v207_v43 = vld [vmem:[%s1010_s2 + $0x40] sm:$0xff]  ;;  %s571_s16 = sshll.u32 %s790_s15, 4  ;;  %s572_s16 = int_to_ptr.vmem [resolvable:$true] %s571_s16 }
   0x9   :  { %714 = vmatpush3.bf16.msra.mxu0 %v711_v9  ;;  %v721_v32 = vpack.c.bf16 %v202_v29, %v199_v26  ;;  %v727_v33 = vpack.c.bf16 %v204_v31, %v201_v30  ;;  %v723_v37 = vpack.c.bf16 %v209_v35, %v206_v34  ;;  %v585_v39 = vsel %vm42_vm6, 1.0, %v787_v7  ;;  %v210_v44 = vld [vmem:[%s1010_s2 + $0x58] sm:$0xff]  ;;  %v465_v53 = vld [vmem:[%s1012_s4] sm:$0xff]  ;;  %v466_v54 = vld [vmem:[%s1012_s4 + $0x8] sm:$0xff]  ;;  %s763_s17 = scalar_lea.vmem %s572_s16, 32  ;;  %p768_p1 = scmp.lt.s32.totalorder %s572_s16, %s572_s16 }
   0xa   :  { %716 = vmatprep.subr.bf16.mxu0 %v715_v15  ;;  %66 = vxpose.xlu0.b32.cont [2/7] (short) (narrow) %v581_v16, 32  ;;  %v725_v40 = vpack.c.bf16 %v208_v38, %v205_v36  ;;  %vm43_vm7 = vcmp.eq.s32.totalorder %v32_v27, %v835_v3  ;;  %vm97_vm8 = vcmask 408576   ;;  %v731_v45 = vpack.c.bf16 %v210_v44, %v207_v43  ;;  %v467_v57 = vld [vmem:[%s1012_s4 + $0x10] sm:$0xff]  ;;  %v468_v58 = vld [vmem:[%s1012_s4 + $0x18] sm:$0xff]  ;;  %v469_v60 = vld [vmem:[%s1012_s4 + $0x20] sm:$0xff]  ;;  %p764_p0 = scmp.ne.s32.totalorder %s572_s16, %s763_s17  ;;  %p769_p2 = scmp.lt.s32.totalorder %s763_s17, %s763_s17 }
   0xb   :  { %720 = vmatprep.subr.bf16.mxu1 %v719_v28  ;;  %v586_v41 = vsel %vm43_vm7, 1.0, %v787_v7  ;;  %vm211_vm9 = vcmask 261120   ;;  %v736_v55 = vpack.c.bf16 %v466_v54, %v465_v53  ;;  %v788_v56 = vmov 0.0|0.0   ;;  %v470_v61 = vld [vmem:[%s1012_s4 + $0x28] sm:$0xff]  ;;  %v471_v63 = vld [vmem:[%s1012_s4 + $0x30] sm:$0xff]  ;;  %v472_v0 = vld [vmem:[%s1012_s4 + $0x38] sm:$0xff] }
   0xc   :  { %722 = vmatpush1.bf16.msra.mxu1 %v721_v32  ;;  %v739_v59 = vpack.c.bf16 %v468_v58, %v467_v57  ;;  %v742_v62 = vpack.c.bf16 %v470_v61, %v469_v60  ;;  %v745_v1 = vpack.c.bf16 %v472_v0, %v471_v63  ;;  %v473_v2 = vld [vmem:[%s1012_s4 + $0x40] sm:$0xff]  ;;  %v474_v3 = vld [vmem:[%s1012_s4 + $0x48] sm:$0xff]  ;;  %v475_v5 = vld [vmem:[%s1012_s4 + $0x50] sm:$0xff]  ;;  %vm789_vm10 = vmmov 0   ;;  %p770_p3 = por %p769_p2, %p768_p1 }
   0xd   :  { %718 = vmatpush3.bf16.msra.mxu0 %v715_v15  ;;  %724 = vmatprep.subr.bf16.mxu1 %v723_v37  ;;  %v748_v4 = vpack.c.bf16 %v474_v3, %v473_v2  ;;  %v476_v6 = vld [vmem:[%s1012_s4 + $0x58] sm:$0xff]  ;;  %v477_v10 = vld [vmem:[%s1012_s4 + $0x60] sm:$0xff]  ;;  %v478_v11 = vld [vmem:[%s1012_s4 + $0x68] sm:$0xff]  ;;  %vm415_vm11 = vcmp.lt.s32.totalorder %v844_v8, 6  ;;  %vm402_vm12 = vcmp.lt.s32.totalorder %v844_v8, 7  ;;  %vm490_vm15 = vcmask 1041409  }
   0xe   :  { %650 = vmatprep.subr.msk.mxu0 %vm110_vm3, %v64_v18  ;;  %67 = vxpose.xlu0.b32.cont [3/7] (short) (narrow) %v582_v19, 32  ;;  %v751_v9 = vpack.c.bf16 %v476_v6, %v475_v5  ;;  %v754_v13 = vpack.c.bf16 %v478_v11, %v477_v10  ;;  %v479_v14 = vld [vmem:[%s1012_s4 + $0x70] sm:$0xff]  ;;  %v480_v15 = vld [vmem:[%s1012_s4 + $0x78] sm:$0xff]  ;;  %vm563_vm0 = vcmask 9216   ;;  %p771_p4 = pnand %p770_p3, %p764_p0 }
   0xf   :  { %v757_v16 = vpack.c.bf16 %v480_v15, %v479_v14 }
  0x10   :  { %726 = vmatpush1.bf16.msra.mxu1 %v725_v40 }
  0x11   :  { %651 = vmatpush3.msk.msra.mxu0 %vm110_vm3, %v64_v18  ;;  %735 = vmatprep.subr.bf16.mxu1 %v788_v56 }
  0x12   :  { %68 = vxpose.xlu0.b32.cont [4/7] (short) (narrow) %v583_v21, 32  ;;  %728 = vmatprep.subr.bf16.mxu0 %v727_v33 }
  0x16   :  { %69 = vxpose.xlu0.b32.cont [5/7] (short) (narrow) %v584_v23, 32 }
  0x1a   :  { %70 = vxpose.xlu0.b32.cont [6/7] (short) (narrow) %v585_v39, 32 }
  0x1e   :  { %71 = vxpose.xlu0.b32.end [7/7] (short) (narrow) %v586_v41, 32  ;;  %v600_v41 = vld [vmem:[%s1011_s3] ss:$0 sm:$0xff] }
  0x86   :  { %v81_v42 = vpop.trf.xlu0 }
  0x87   :  { %652 = vmatprep.mubr.msk.f32.mxu0 %vm97_vm8, %v81_v42 }
  0x8a   :  { %v82_v46 = vpop.trf.xlu0 }
  0x8b   :  { %653 = vmatmul.mubr.msk.f32.vlgmr.msra.gmra.mrb[0].mxu0 %vm97_vm8, %v82_v46  ;;  %v440_v46 = vand.u32 15, %v855_v12 }
  0x8c   :  { %730 = vmatpush3.bf16.msra.mxu0 %v727_v33 }
  0x8d   :  { %732 = vmatprep.subr.bf16.mxu0 %v731_v45  ;;  %vm444_vm13 = vcmp.lt.s32.totalorder %v440_v46, 14 }
  0x8e   :  { %v83_v47 = vpop.trf.xlu0 }
  0x8f   :  { %655 = vmatprep.mubr.msk.f32.mxu0 %vm97_vm8, %v83_v47 }
  0x90   :  { %734 = vmatpush3.bf16.msra.mxu0 %v731_v45 }
  0x92   :  { %v84_v48 = vpop.trf.xlu0 }
  0x93   :  { %656 = vmatmul.mubr.msk.f32.gmra.mrb[2].mxu0 %vm97_vm8, %v84_v48 }
 0x15e   :  { %v654_v49 = vpop.f32.mrb[0].mxu0 }
 0x15f   :  { %v180_v50 = vpop.f32.mrb[1].mxu0 }
 0x160   :  { %592 = vmatmul.mubr.msk.f32.vlgmr.msra.gmra.mrb[0].mxu1 %vm211_vm9, %v180_v50  ;;  %666 = vmatprep.mubr.msk.f32.mxu0 %vm211_vm9, %v180_v50 }
 0x161   :  { %667 = vmatmul.mubr.msk.f32.vlgmr.msra.gmra.mrb[4].mxu0 %vm211_vm9, %v654_v49  ;;  %294 = vmatprep.mubr.f32.mxu1 %v787_v7 }
 0x162   :  { %737 = vmatpush3.bf16.msra.mxu1 %v736_v55  ;;  %v442_v55 = vand.u32 15, %v864_v17 }
 0x163   :  { %738 = vmatprep.subr.bf16.mxu1 %v788_v56 }
 0x164   :  { %593 = vmatmul.mubr.msk.f32.gmra.mrb[2].mxu1 %vm211_vm9, %v654_v49  ;;  %vm446_vm14 = vcmp.lt.s32.totalorder %v442_v55, 14 }
 0x165   :  { %300 = vmatprep.mubr.f32.mxu1 %v787_v7 }
 0x166   :  { %v657_v51 = vpop.f32.mrb[2].mxu0  ;;  %740 = vmatpush3.bf16.msra.mxu1 %v739_v59 }
 0x167   :  { %v190_v52 = vpop.f32.mrb[3].mxu0  ;;  %741 = vmatprep.subr.bf16.mxu1 %v788_v56 }
 0x168   :  { %594 = vmatmul.mubr.msk.f32.gmra.mrb[4].mxu1 %vm211_vm9, %v190_v52  ;;  %669 = vmatprep.mubr.msk.f32.mxu0 %vm211_vm9, %v190_v52 }
 0x169   :  { %670 = vmatmul.mubr.msk.f32.gmra.mrb[6].mxu0 %vm211_vm9, %v657_v51  ;;  %306 = vmatprep.mubr.f32.mxu1 %v787_v7 }
 0x16a   :  { %743 = vmatpush3.bf16.msra.mxu1 %v742_v62 }
 0x16b   :  { %744 = vmatprep.subr.bf16.mxu1 %v788_v56 }
 0x16c   :  { %595 = vmatmul.mubr.msk.f32.gmra.mrb[6].mxu1 %vm211_vm9, %v657_v51 }
 0x16d   :  { %704 = vmatprep.mubr.msk.f32.mxu1 %vm789_vm10, %v787_v7 }
 0x16e   :  { %746 = vmatpush3.bf16.msra.mxu1 %v745_v1 }
 0x16f   :  { %747 = vmatprep.subr.bf16.mxu1 %v788_v56 }
 0x172   :  { %749 = vmatpush3.bf16.msra.mxu1 %v748_v4 }
 0x173   :  { %750 = vmatprep.subr.bf16.mxu1 %v788_v56 }
 0x176   :  { %752 = vmatpush3.bf16.msra.mxu1 %v751_v9 }
 0x177   :  { %753 = vmatprep.subr.bf16.mxu1 %v788_v56 }
 0x17a   :  { %755 = vmatpush3.bf16.msra.mxu1 %v754_v13 }
 0x17b   :  { %756 = vmatprep.subr.bf16.mxu1 %v788_v56 }
 0x17e   :  { %758 = vmatpush3.bf16.msra.mxu1 %v757_v16 }
 0x233   :  { %v290_v18 = vpop.f32.mrb[0].mxu1 }
 0x234   :  { %v292_v19 = vpop.f32.mrb[1].mxu1  ;;  %v668_v20 = vpop.f32.mrb[4].mxu0 }
 0x235   :  { %v412_v21 = vrot.slane %v668_v20, 2  ;;  %v379_v7 = vpop.f32.mrb[5].mxu0  ;;  %v398_v26 = vrot.slane %v292_v19, 1 }
 0x236   :  { %v411_v22 = vrot.slane %v379_v7, 2 }
 0x237   :  { %v296_v23 = vpop.f32.mrb[2].mxu1 }
 0x238   :  { %v418_v24 = vsel %vm415_vm11, %v411_v22, %v412_v21  ;;  %v298_v25 = vpop.f32.mrb[3].mxu1 }
 0x239   :  { %v399_v27 = vrot.slane %v298_v25, 1 }
 0x23b   :  { %v405_v28 = vsel %vm402_vm12, %v398_v26, %v399_v27  ;;  %v302_v29 = vpop.f32.mrb[4].mxu1 }
 0x23c   :  { %v407_v30 = vadd.f32 %v405_v28, %v290_v18  ;;  %v304_v31 = vpop.f32.mrb[5].mxu1  ;;  %v671_v32 = vpop.f32.mrb[6].mxu0  ;;  %v601_v18 = vld [vmem:[%s1013_s5] ss:$0 sm:$0xff] }
 0x23d   :  { %v400_v33 = vrot.slane %v304_v31, 1  ;;  %v414_v34 = vrot.slane %v671_v32, 2  ;;  %v389_v35 = vpop.f32.mrb[7].mxu0 }
 0x23e   :  { %v420_v36 = vadd.f32 %v418_v24, %v407_v30  ;;  %v413_v37 = vrot.slane %v389_v35, 2 }
 0x23f   :  { %v404_v38 = vsel %vm402_vm12, %v399_v27, %v400_v33  ;;  %v419_v39 = vsel %vm415_vm11, %v414_v34, %v411_v22  ;;  %v308_v40 = vpop.f32.mrb[6].mxu1 }
 0x240   :  { %v408_v42 = vadd.f32 %v404_v38, %v296_v23  ;;  %v416_v43 = vsel %vm415_vm11, %v413_v37, %v414_v34  ;;  %v417_v44 = vsel %vm415_vm11, %v412_v21, %v413_v37  ;;  %v310_v45 = vpop.f32.mrb[7].mxu1  ;;  %v431_v49 = vadd.f32 %v600_v41, %v420_v36 }
 0x241   :  { %v401_v47 = vrot.slane %v310_v45, 1 }
 0x242   :  { %v421_v48 = vadd.f32 %v417_v44, %v408_v42  ;;  %v435_v59 = vmax.f32 %v431_v49, 0.0 }
 0x243   :  { %v403_v50 = vsel %vm402_vm12, %v400_v33, %v401_v47  ;;  %v406_v51 = vsel %vm402_vm12, %v401_v47, %v398_v26 }
 0x244   :  { %v432_v52 = vadd.f32 %v600_v41, %v421_v48  ;;  %v409_v53 = vadd.f32 %v403_v50, %v302_v29  ;;  %v410_v54 = vadd.f32 %v406_v51, %v308_v40 }
 0x246   :  { %v436_v56 = vmax.f32 %v432_v52, 0.0  ;;  %v422_v57 = vadd.f32 %v416_v43, %v409_v53  ;;  %v423_v58 = vadd.f32 %v419_v39, %v410_v54 }
 0x248   :  { %v448_v12 = vsel %vm444_vm13, %v436_v56, 0.0  ;;  %v433_v60 = vadd.f32 %v600_v41, %v422_v57  ;;  %v434_v61 = vadd.f32 %v600_v41, %v423_v58 }
 0x249   :  { %v451_v62 = vmax.f32 %v435_v59, %v448_v12 }
 0x24a   :  { %v437_v63 = vmax.f32 %v433_v60, 0.0  ;;  %v438_v0 = vmax.f32 %v434_v61, 0.0 }
 0x24b   :  { %v452_v1 = vrot.slane %v451_v62, 4 }
 0x24c   :  { %v450_v8 = vsel %vm446_vm14, %v438_v0, 0.0 }
 0x24d   :  { %v453_v2 = vmax.f32 %v451_v62, %v452_v1  ;;  %v458_v3 = vmax.f32 %v437_v63, %v450_v8 }
 0x24f   :  { %v459_v4 = vrot.slane %v458_v3, 4  ;;  %v454_v5 = vrot.slane %v453_v2, 2 }
 0x251   :  { %v455_v6 = vmax.f32 %v453_v2, %v454_v5  ;;  %v460_v9 = vmax.f32 %v458_v3, %v459_v4 }
 0x253   :  { %v461_v17 = vrot.slane %v460_v9, 2  ;;  %v456_v10 = vrot.slane %v455_v6, 1 }
 0x255   :  { %v462_v11 = vmax.f32 %v460_v9, %v461_v17  ;;  %v457_v14 = vmax.f32 %v455_v6, %v456_v10 }
 0x257   :  { %v463_v13 = vrot.slane %v462_v11, 1 }
 0x259   :  { %v464_v15 = vmax.f32 %v462_v11, %v463_v13 }
 0x25b   :  { %v491_v16 = vsel %vm490_vm15, %v464_v15, %v457_v14 }
 0x25c   :  { %705 = vmatmul.mubr.f32.vlgmr.msra.gmra.mrb[8].mxu1 %v491_v16 }
 0x32f   :  { %v559_v19 = vpop.f32.mrb[8].mxu1 }
 0x330   :  { %v560_v20 = vadd.f32 %v601_v18, %v559_v19  ;;  %v706_v21 = vpop.f32.mrb[9].mxu1 }
 0x332   :  { %564 = vst.msk [vmem:[#allocation2] sm:$0x3] %vm563_vm0, %v560_v20 }
 0x333   :  { %774 = shalt.err (!%p771_p4)
}
 0x334   :  { %s775_s20 = scalar_lea.hbm %s1014_s6, 32 }
 0x335   :  { %p776_p5 = scmp.ne.s32.totalorder %s1014_s6, %s775_s20  ;;  %p779_p6 = scmp.lt.u32.totalorder %s775_s20, %s1014_s6 }
 0x337   :  { %p781_p7 = pnand %p779_p6, %p776_p5 }
 0x339   :  { %784 = shalt.err (!%p781_p7)
}
 0x33a   :  { %574 = dma.vmem_to_hbm [thread:$0]  %s572_s16, 32, %s1014_s6, [#allocation3]  }
 0x33b   :  { %785 = dma.done.wait [#allocation3], 32  }
 0x33c   :  { %786 = vsyncadd [#allocation3], 4294967264 }
 0x33d   :  { %578 = vsyncpa [#allocation3], 1 }

</bundles_post_ra>
